<compile_context>
chip_gen: v5e
topology: v5e:2x2
jax: 0.10.0
libtpu: 0.0.40
codegen_flags: <defaults>
</compile_context>

<pallas_src>
import math

import jax
import jax.numpy as jnp
from jax.experimental import pallas as pl
from jax.experimental.pallas import tpu as pltpu


def _sinusoidal_kernel(x_ref, freqs_ref, o_ref):
    # x_ref:     (TB, 1)    float32  -- timesteps for this batch tile
    # freqs_ref: (1, half)  float32  -- precomputed frequency table (constant)
    # o_ref:     (TB, dim)  out dtype
    half = freqs_ref.shape[1]
    # broadcast (TB,1) * (1,half) -> (TB,half); pure VPU work.
    arg = x_ref[...] * freqs_ref[...]
    # store the two halves directly -- no concatenated intermediate.
    o_ref[:, :half] = jnp.sin(arg).astype(o_ref.dtype)
    o_ref[:, half:] = jnp.cos(arg).astype(o_ref.dtype)


def sinusoidal_pos_emb(x: jax.Array, dim: int, *, out_dtype=jnp.float32,
                       block_rows: int | None = None) -> jax.Array:
    """x: (B,) array of timesteps -> (B, dim) sinusoidal embedding."""
    assert dim % 2 == 0 and dim >= 4, "dim must be even and >= 4"
    half = dim // 2
    b = x.shape[0]

    x2d = x.astype(jnp.float32).reshape(b, 1)

    # frequency table: computed once on the host-side JAX graph (half exps),
    # fed to the kernel as a tiny constant block.
    scale = math.log(10000.0) / (half - 1)
    freqs = jnp.exp(jnp.arange(half, dtype=jnp.float32) * -scale).reshape(1, half)

    # --- pick a batch tile size -------------------------------------------
    # Target big tiles (>=0.5M output elems) to amortize the ~0.35us per-step
    # overhead, but keep the double-buffered output tile (2*TB*dim*4B) well
    # under the smallest scoped-VMEM default across generations (v7x: 32 MiB).
    if block_rows is None:
        vmem_budget = 8 * 1024 * 1024                     # conservative, all gens
        tb = vmem_budget // (8 * dim)                     # 2 bufs * dim * 4B
        tb = max(8, min(2048, (tb // 8) * 8))             # multiple of 8 sublanes
    else:
        tb = block_rows
    if b <= tb:
        tb = b      # single step; block_shape == array shape satisfies (8,128)

    grid = (pl.cdiv(b, tb),)

    return pl.pallas_call(
        _sinusoidal_kernel,
        out_shape=jax.ShapeDtypeStruct((b, dim), out_dtype),
        grid=grid,
        in_specs=[
            pl.BlockSpec((tb, 1), lambda i: (i, 0)),       # batch tile of x
            pl.BlockSpec((1, half), lambda i: (0, 0)),     # constant freq table
        ],
        out_specs=pl.BlockSpec((tb, dim), lambda i: (i, 0)),
        compiler_params=pltpu.CompilerParams(
            dimension_semantics=("parallel",),             # 2 TCs on v7x
        ),
    )(x2d, freqs)


def _reference(x: jax.Array, dim: int) -> jax.Array:
    half = dim // 2
    emb = math.log(10000.0) / (half - 1)
    emb = jnp.exp(jnp.arange(half, dtype=jnp.float32) * -emb)
    emb = x.astype(jnp.float32)[:, None] * emb[None, :]
    return jnp.concatenate([jnp.sin(emb), jnp.cos(emb)], axis=-1)


if __name__ == "__main__":
    key = jax.random.PRNGKey(0)
    # small demo shapes; dim=128 keeps the output lane-dense (unmasked stores).
    B, DIM = 16, 128
    x = jax.random.uniform(key, (B,), dtype=jnp.float32, minval=0.0, maxval=1000.0)

    out = sinusoidal_pos_emb(x, DIM)
    out = jax.block_until_ready(out)

    ref = _reference(x, DIM)
    assert out.shape == (B, DIM)
    assert out.dtype == jnp.float32
    assert jnp.allclose(out, ref, atol=1e-5, rtol=1e-5), "mismatch vs reference"

    # also exercise the batch-tiled path (B > TB) with a non-divisible batch.
    B2 = 2056  # > one 2048-row tile, not a multiple of the tile size
    x2 = jax.random.uniform(jax.random.PRNGKey(1), (B2,), dtype=jnp.float32,
                            minval=0.0, maxval=1000.0)
    out2 = jax.block_until_ready(sinusoidal_pos_emb(x2, DIM))
    assert jnp.allclose(out2, _reference(x2, DIM), atol=1e-5, rtol=1e-5)

    print("KERNEL_OK")
</pallas_src>

<mosaic_0001>
module attributes {stable_mosaic.version = 11 : i64} {
  func.func @_sinusoidal_kernel(%arg0: i32, %arg1: memref<16x1xf32, #tpu.memory_space<vmem>>, %arg2: memref<1x64xf32, #tpu.memory_space<vmem>>, %arg3: memref<16x128xf32, #tpu.memory_space<vmem>>) attributes {dimension_semantics = [#tpu.dimension_semantics<parallel>], iteration_bounds = array<i64: 1>, scalar_prefetch = 0 : i64, scratch_operands = 0 : i64, tpu.core_type = #tpu.core_type<tc>, window_params = [{transform_indices = @transform_0, window_bounds = array<i64: 16, 1>}, {pipeline_mode = #tpu.pipeline_mode<synchronous>, transform_indices = @transform_1, window_bounds = array<i64: 1, 64>}, {transform_indices = @transform_2, window_bounds = array<i64: 16, 128>}]} {
    %c0 = arith.constant 0 : index
    %c0_0 = arith.constant 0 : index
    %0 = vector.load %arg1[%c0, %c0_0] : memref<16x1xf32, #tpu.memory_space<vmem>>, vector<16x1xf32>
    %c0_1 = arith.constant 0 : index
    %c0_2 = arith.constant 0 : index
    %1 = vector.load %arg2[%c0_1, %c0_2] : memref<1x64xf32, #tpu.memory_space<vmem>>, vector<1x64xf32>
    %2 = vector.broadcast %0 : vector<16x1xf32> to vector<16x64xf32>
    %3 = vector.broadcast %1 : vector<1x64xf32> to vector<16x64xf32>
    %4 = arith.mulf %2, %3 : vector<16x64xf32>
    %5 = math.sin %4 : vector<16x64xf32>
    %c0_3 = arith.constant 0 : index
    %c0_4 = arith.constant 0 : index
    %6 = vector.load %arg3[%c0_3, %c0_4] : memref<16x128xf32, #tpu.memory_space<vmem>>, vector<16x64xf32>
    tpu.vector_store %arg3[%c0_3, %c0_4], %5 {strides = array<i32>} : memref<16x128xf32, #tpu.memory_space<vmem>>, vector<16x64xf32>,
    %7 = math.cos %4 : vector<16x64xf32>
    %c0_5 = arith.constant 0 : index
    %c64 = arith.constant 64 : index
    %8 = vector.load %arg3[%c0_5, %c64] : memref<16x128xf32, #tpu.memory_space<vmem>>, vector<16x64xf32>
    tpu.vector_store %arg3[%c0_5, %c64], %7 {strides = array<i32>} : memref<16x128xf32, #tpu.memory_space<vmem>>, vector<16x64xf32>,
    return
  }
  func.func @transform_0(%arg0: i32) -> (i32, i32) {
    %c0_i32 = arith.constant 0 : i32
    %c0_i32_0 = arith.constant 0 : i32
    return %arg0, %c0_i32 : i32, i32
  }
  func.func @transform_1(%arg0: i32) -> (i32, i32) {
    %c0_i32 = arith.constant 0 : i32
    %c0_i32_0 = arith.constant 0 : i32
    %c0_i32_1 = arith.constant 0 : i32
    return %c0_i32, %c0_i32_0 : i32, i32
  }
  func.func @transform_2(%arg0: i32) -> (i32, i32) {
    %c0_i32 = arith.constant 0 : i32
    %c0_i32_0 = arith.constant 0 : i32
    return %arg0, %c0_i32 : i32, i32
  }
}

</mosaic_0001>

<bundles_post_ra>
// kernel: tpu_custom_call.1
= control target key start
LH: loop header
LB: loop body
LE: loop exit
PB: predicated region body
PF: predicated region fallthrough
CT: control target
= control target key end

     0   :  { %v731_v1 = vmov 0   ;;  %s947_s0 = inlined_call_operand.vmem [shape: f32[16,1], index: 0, kind: input, shape index: {}]   ;;  %s948_s1 = inlined_call_operand.vmem [shape: f32[1,64], index: 1, kind: input, shape index: {}]   ;;  %s949_s2 = inlined_call_operand.hbm [shape: f32[16,128], index: 2, kind: output, shape index: {}]  }
   0x1   :  { %v12_v0 = vld [vmem:[%s947_s0] sm:$0xff]  ;;  %703 = vset.pattern.permute.xlu0 %v731_v1 }
   0x2   :  { %17 = vperm.xlu0 %703, %v12_v0  }
   0x3   :  { %7 = vsyncpa [#allocation3], 0  ;;  %v13_v2 = vld [vmem:[%s947_s0 + $0x8] sm:$0xff]  ;;  %v704_v3 = vld [vmem:[%s948_s1] ss:$0 sm:$0xff]  ;;  %s738_s0 = smov 64  }
   0x4   :  { %v732_v26 = vmov 920167782   ;;  %v733_v28 = vmov 1326507024   ;;  %v734_v30 = vmov 2475754826  }
   0x5   :  { %v735_v32 = vmov 2102212464   ;;  %v736_v36 = vmov 2131351028   ;;  %v737_v39 = vmov 683565275  }
   0x6   :  { %s739_s1 = smov [#allocation2]   ;;  %s668_s18 = sshll.u32 %s949_s2, 4  ;;  %s669_s18 = int_to_ptr.hbm [resolvable:$true] %s668_s18 }
   0x7   :  { %s666_s15 = sshll.u32 %s739_s1, 4  ;;  %s740_s19 = smov 128   ;;  %s667_s15 = int_to_ptr.vmem [resolvable:$true] %s666_s15 }
   0x8   :  { %s741_s20 = smov 8  }
   0xa   :  { %22 = vperm.xlu0 %703, %v13_v2  }
  0x74   :  { %v18_v4 = vpop.permute.xlu0 %17 }
  0x75   :  { %v767_v5 = vmul.f32 %v704_v3, %v18_v4 }
  0x77   :  { %v33_v6 = vand.u32 2139095040, %v767_v5  ;;  %v30_v7 = vand.u32 2147483647, %v767_v5 }
  0x79   :  { %v34_v8 = vshrl.u32 %v33_v6, 23  ;;  %v37_v11 = vand.u32 8388607, %v30_v7 }
  0x7b   :  { %v680_v9 = vadd.s32 4294967169, %v34_v8  ;;  %v38_v17 = vor.u32 8388608, %v37_v11 }
  0x7c   :  { %v23_v10 = vpop.permute.xlu0 %22 }
  0x7d   :  { %v40_v12 = vadd.s32 1, %v680_v9  ;;  %v773_v13 = vmul.f32 %v704_v3, %v23_v10  ;;  %v779_v24 = vshll.u32 %v38_v17, 8 }
  0x7f   :  { %vm41_vm0 = vcmp.gt.s32.totalorder %v40_v12, 0  ;;  %v185_v14 = vand.u32 2147483647, %v773_v13  ;;  %v188_v15 = vand.u32 2139095040, %v773_v13  ;;  %v79_v50 = vand.u32 65535, %v779_v24 }
  0x80   :  { %v42_v16 = vsel %vm41_vm0, %v40_v12, 0  ;;  %v80_v51 = vshrl.u32 %v779_v24, 16 }
  0x81   :  { %v44_v18 = vand.u32 31, %v42_v16  ;;  %v189_v19 = vshrl.u32 %v188_v15, 23  ;;  %v192_v20 = vand.u32 8388607, %v185_v14  ;;  %v781_v25 = vshrl.u32 %v42_v16, 5 }
  0x83   :  { %v45_v21 = vsub.s32 32, %v44_v18  ;;  %v683_v22 = vadd.s32 4294967169, %v189_v19  ;;  %v193_v23 = vor.u32 8388608, %v192_v20  ;;  %v56_v33 = vshll.u32 %v735_v32, %v44_v18 }
  0x84   :  { %v59_v34 = vshll.u32 %v732_v26, %v44_v18  ;;  %v47_v40 = vshll.u32 %v737_v39, %v44_v18  ;;  %v50_v41 = vshll.u32 %v734_v30, %v44_v18  ;;  %v53_v44 = vshll.u32 %v736_v36, %v44_v18 }
  0x85   :  { %v57_v27 = vshrl.u32 %v732_v26, %v45_v21  ;;  %v60_v29 = vshrl.u32 %v733_v28, %v45_v21  ;;  %v48_v31 = vshrl.u32 %v734_v30, %v45_v21  ;;  %v195_v35 = vadd.s32 1, %v683_v22 }
  0x86   :  { %v51_v37 = vshrl.u32 %v736_v36, %v45_v21  ;;  %v783_v38 = vshll.u32 %v193_v23, 8  ;;  %v54_v42 = vshrl.u32 %v735_v32, %v45_v21  ;;  %vm65_vm2 = vcmp.lt.s32.totalorder %v781_v25, 4 }
  0x87   :  { %v58_v43 = vor.u32 %v57_v27, %v56_v33  ;;  %vm196_vm1 = vcmp.gt.s32.totalorder %v195_v35, 0  ;;  %v61_v45 = vor.u32 %v60_v29, %v59_v34  ;;  %v49_v47 = vor.u32 %v48_v31, %v47_v40 }
  0x88   :  { %v197_v46 = vsel %vm196_vm1, %v195_v35, 0  ;;  %v52_v48 = vor.u32 %v51_v37, %v50_v41  ;;  %v790_v52 = vand.u32 65535, %v783_v38  ;;  %v46_v53 = vshrl.u32 %v737_v39, %v45_v21 }
  0x89   :  { %v199_v49 = vand.u32 31, %v197_v46  ;;  %v55_v54 = vor.u32 %v54_v42, %v53_v44  ;;  %v71_v55 = vsel %vm65_vm2, %v58_v43, 920167782  ;;  %v798_v57 = vshrl.u32 %v783_v38, 16 }
  0x8a   :  { %vm62_vm3 = vcmp.lt.s32.totalorder %v781_v25, 1  ;;  %v75_v58 = vsel %vm65_vm2, %v61_v45, 1326507024  ;;  %v803_v59 = vshrl.u32 %v197_v46, 5  ;;  %vm64_vm4 = vcmp.lt.s32.totalorder %v781_v25, 3 }
  0x8b   :  { %v795_v56 = vsub.s32 32, %v199_v49  ;;  %v70_v60 = vsel %vm62_vm3, %v49_v47, %v52_v48  ;;  %v211_v62 = vshll.u32 %v735_v32, %v199_v49  ;;  %v214_v0 = vshll.u32 %v732_v26, %v199_v49 }
  0x8c   :  { %v72_v6 = vsel %vm64_vm4, %v55_v54, %v71_v55  ;;  %v202_v8 = vshll.u32 %v737_v39, %v199_v49  ;;  %v205_v9 = vshll.u32 %v734_v30, %v199_v49  ;;  %vm63_vm5 = vcmp.lt.s32.totalorder %v781_v25, 2 }
  0x8d   :  { %v203_v61 = vshrl.u32 %v734_v30, %v795_v56  ;;  %v212_v63 = vshrl.u32 %v732_v26, %v795_v56  ;;  %v206_v2 = vshrl.u32 %v736_v36, %v795_v56  ;;  %v209_v3 = vshrl.u32 %v735_v32, %v795_v56 }
  0x8e   :  { %v215_v4 = vshrl.u32 %v733_v28, %v795_v56  ;;  %v208_v11 = vshll.u32 %v736_v36, %v199_v49  ;;  %v73_v15 = vsel %vm63_vm5, %v70_v60, %v72_v6  ;;  %v74_v16 = vsel %vm62_vm3, %v52_v48, %v55_v54 }
  0x8f   :  { %v213_v10 = vor.u32 %v212_v63, %v211_v62  ;;  %v821_v17 = vor.u32 %v203_v61, %v202_v8  ;;  %vm220_vm6 = vcmp.lt.s32.totalorder %v803_v59, 4  ;;  %v67_v18 = vsel %vm65_vm2, %v55_v54, 2102212464 }
  0x90   :  { %v216_v12 = vor.u32 %v215_v4, %v214_v0  ;;  %v76_v19 = vsel %vm64_vm4, %v58_v43, %v75_v58  ;;  %v828_v20 = vor.u32 %v206_v2, %v205_v9  ;;  %v830_v21 = vor.u32 %v209_v3, %v208_v11 }
  0x91   :  { %v77_v22 = vsel %vm63_vm5, %v74_v16, %v76_v19  ;;  %v103_v23 = vand.u32 65535, %v73_v15  ;;  %v226_v26 = vsel %vm220_vm6, %v213_v10, 920167782  ;;  %v104_v29 = vshrl.u32 %v73_v15, 16 }
  0x92   :  { %v81_v27 = vand.u32 65535, %v77_v22  ;;  %v82_v28 = vshrl.u32 %v77_v22, 16  ;;  %vm217_vm7 = vcmp.lt.s32.totalorder %v803_v59, 1  ;;  %v230_v30 = vsel %vm220_vm6, %v216_v12, 1326507024 }
  0x93   :  { %v66_v31 = vsel %vm62_vm3, %v46_v53, %v49_v47  ;;  %v107_v32 = vmul.u32 %v103_v23, %v80_v51  ;;  %vm219_vm8 = vcmp.lt.s32.totalorder %v803_v59, 3  ;;  %v68_v33 = vsel %vm64_vm4, %v52_v48, %v67_v18 }
  0x94   :  { %v84_v34 = vmul.u32 %v82_v28, %v79_v50  ;;  %v85_v35 = vmul.u32 %v81_v27, %v80_v51  ;;  %v225_v36 = vsel %vm217_vm7, %v821_v17, %v828_v20  ;;  %v227_v37 = vsel %vm219_vm8, %v830_v21, %v226_v26 }
  0x95   :  { %v229_v40 = vsel %vm217_vm7, %v828_v20, %v830_v21  ;;  %v106_v41 = vmul.u32 %v104_v29, %v79_v50  ;;  %v231_v42 = vsel %vm219_vm8, %v213_v10, %v230_v30  ;;  %v83_v43 = vmul.u32 %v81_v27, %v79_v50 }
  0x96   :  { %v87_v44 = vshll.u32 %v84_v34, 16  ;;  %v105_v45 = vmul.u32 %v103_v23, %v79_v50  ;;  %v86_v46 = vmul.u32 %v82_v28, %v80_v51  ;;  %v108_v47 = vmul.u32 %v104_v29, %v80_v51 }
  0x97   :  { %v109_v48 = vshll.u32 %v106_v41, 16  ;;  %v111_v49 = vshll.u32 %v107_v32, 16  ;;  %v89_v53 = vshll.u32 %v85_v35, 16  ;;  %vm218_vm10 = vcmp.lt.s32.totalorder %v803_v59, 2 }
  0x98   :  { %vm91_vm9 = vc.u32 %v83_v43, %v87_v44  ;;  %v93_v54 = vadd.s32 %v87_v44, %v83_v43  ;;  %v228_v60 = vsel %vm218_vm10, %v225_v36, %v227_v37  ;;  %v88_v61 = vshrl.u32 %v84_v34, 16 }
  0x99   :  { %v92_v55 = vsel %vm91_vm9, 1, %v731_v1  ;;  %vm113_vm11 = vc.u32 %v105_v45, %v109_v48  ;;  %v115_v58 = vadd.s32 %v109_v48, %v105_v45  ;;  %v110_v63 = vshrl.u32 %v106_v41, 16 }
  0x9a   :  { %v94_v62 = vadd.s32 %v92_v55, %v86_v46  ;;  %vm95_vm12 = vc.u32 %v93_v54, %v89_v53  ;;  %v114_v50 = vsel %vm113_vm11, 1, %v731_v1  ;;  %v232_v4 = vsel %vm218_vm10, %v229_v40, %v231_v42 }
  0x9b   :  { %v96_v51 = vsel %vm95_vm12, 1, %v731_v1  ;;  %v116_v0 = vadd.s32 %v114_v50, %v108_v47  ;;  %vm117_vm13 = vc.u32 %v115_v58, %v111_v49  ;;  %v258_v6 = vand.u32 65535, %v228_v60 }
  0x9c   :  { %v98_v2 = vadd.s32 %v96_v51, %v94_v62  ;;  %v118_v3 = vsel %vm117_vm13, 1, %v731_v1  ;;  %v236_v9 = vand.u32 65535, %v232_v4  ;;  %v237_v10 = vshrl.u32 %v232_v4, 16 }
  0x9d   :  { %v120_v8 = vadd.s32 %v118_v3, %v116_v0  ;;  %v259_v11 = vshrl.u32 %v228_v60, 16  ;;  %v69_v12 = vsel %vm63_vm5, %v66_v31, %v68_v33  ;;  %v90_v15 = vshrl.u32 %v85_v35, 16 }
  0x9e   :  { %v99_v16 = vadd.s32 %v98_v2, %v88_v61  ;;  %v112_v18 = vshrl.u32 %v107_v32, 16  ;;  %v239_v22 = vmul.u32 %v237_v10, %v790_v52  ;;  %v240_v23 = vmul.u32 %v236_v9, %v798_v57 }
  0x9f   :  { %v121_v19 = vadd.s32 %v120_v8, %v110_v63  ;;  %v872_v27 = vadd.s32 %v115_v58, %v111_v49  ;;  %v261_v28 = vmul.u32 %v259_v11, %v790_v52  ;;  %v262_v29 = vmul.u32 %v258_v6, %v798_v57 }
  0xa0   :  { %v870_v26 = vadd.s32 %v99_v16, %v90_v15  ;;  %v123_v25 = vmul.u32 %v779_v24, %v69_v12  ;;  %v238_v31 = vmul.u32 %v236_v9, %v790_v52  ;;  %v242_v33 = vshll.u32 %v239_v22, 16 }
  0xa1   :  { %v122_v30 = vadd.s32 %v121_v19, %v112_v18  ;;  %v241_v32 = vmul.u32 %v237_v10, %v798_v57  ;;  %v260_v34 = vmul.u32 %v258_v6, %v790_v52  ;;  %v264_v35 = vshll.u32 %v261_v28, 16 }
  0xa2   :  { %vm125_vm14 = vc.u32 %v870_v26, %v872_v27  ;;  %v244_v37 = vshll.u32 %v240_v23, 16  ;;  %vm246_vm15 = vc.u32 %v238_v31, %v242_v33  ;;  %v248_v40 = vadd.s32 %v242_v33, %v238_v31 }
  0xa3   :  { %v126_v36 = vadd.s32 1, %v122_v30  ;;  %v247_v41 = vsel %vm246_vm15, 1, %v731_v1  ;;  %v263_v42 = vmul.u32 %v259_v11, %v798_v57  ;;  %v266_v24 = vshll.u32 %v262_v29, 16 }
  0xa4   :  { %vm268_vm0 = vc.u32 %v260_v34, %v264_v35  ;;  %v249_v44 = vadd.s32 %v247_v41, %v241_v32  ;;  %vm250_vm1 = vc.u32 %v248_v40, %v244_v37  ;;  %v270_v52 = vadd.s32 %v264_v35, %v260_v34 }
  0xa5   :  { %v127_v43 = vsel %vm125_vm14, %v126_v36, %v122_v30  ;;  %v269_v45 = vsel %vm268_vm0, 1, %v731_v1  ;;  %v251_v47 = vsel %vm250_vm1, 1, %v731_v1  ;;  %v243_v49 = vshrl.u32 %v239_v22, 16 }
  0xa6   :  { %v128_v46 = vadd.s32 %v127_v43, %v123_v25  ;;  %v271_v48 = vadd.s32 %v269_v45, %v263_v42  ;;  %v253_v53 = vadd.s32 %v251_v47, %v249_v44  ;;  %v222_v55 = vsel %vm220_vm6, %v830_v21, 2102212464 }
  0xa7   :  { %vm272_vm2 = vc.u32 %v270_v52, %v266_v24  ;;  %v201_v57 = vshrl.u32 %v737_v39, %v795_v56  ;;  %v245_v62 = vshrl.u32 %v240_v23, 16  ;;  %v265_v50 = vshrl.u32 %v261_v28, 16 }
  0xa8   :  { %v129_v54 = vadd.s32 536870912, %v128_v46  ;;  %v254_v58 = vadd.s32 %v253_v53, %v243_v49  ;;  %v273_v60 = vsel %vm272_vm2, 1, %v731_v1  ;;  %v223_v0 = vsel %vm219_vm8, %v828_v20, %v222_v55 }
  0xa9   :  { %v275_v51 = vadd.s32 %v273_v60, %v271_v48  ;;  %v221_v63 = vsel %vm217_vm7, %v201_v57, %v821_v17  ;;  %v267_v3 = vshrl.u32 %v262_v29, 16  ;;  %v274_v56 = vadd.s32 %v270_v52, %v266_v24 }
  0xaa   :  { %v130_v61 = vshrl.u32 %v129_v54, 30  ;;  %v255_v2 = vadd.s32 %v254_v58, %v245_v62  ;;  %v224_v1 = vsel %vm218_vm10, %v221_v63, %v223_v0  ;;  %v124_v59 = vadd.s32 %v872_v27, %v870_v26 }
  0xab   :  { %v276_v4 = vadd.s32 %v275_v51, %v265_v50  ;;  %v278_v17 = vmul.u32 %v783_v38, %v224_v1  ;;  %vm908_vm8 = vcmp.le.f32.partialorder %v30_v7, 0.7853982  ;;  %vm32_vm9 = vcmp.lt.s32.totalorder %v767_v5, 0 }
  0xac   :  { %v131_v21 = vshll.u32 %v130_v61, 30  ;;  %vm280_vm4 = vc.u32 %v255_v2, %v274_v56  ;;  %v154_v26 = vsub.s32 4, %v130_v61  ;;  %v279_v45 = vadd.s32 %v274_v56, %v255_v2 }
  0xad   :  { %v277_v6 = vadd.s32 %v276_v4, %v267_v3  ;;  %vm187_vm10 = vcmp.lt.s32.totalorder %v773_v13, 0  ;;  %vm921_vm11 = vcmp.le.f32.partialorder %v185_v14, 0.7853982  ;;  %vm340_vm2 = vcmask 523264  }
  0xae   :  { %v132_v39 = vsub.s32 %v128_v46, %v131_v21  ;;  %v155_v52 = vsel %vm32_vm9, %v154_v26, %v130_v61 }
  0xaf   :  { %v281_v9 = vadd.s32 1, %v277_v6  ;;  %v157_v62 = vsel %vm908_vm8, 0, %v155_v52 }
  0xb0   :  { %vm133_vm3 = vcmp.lt.s32.totalorder %v132_v39, 0  ;;  %v134_v8 = vsub.s32 0, %v132_v39  ;;  %v174_v3 = vadd.s32 3, %v157_v62 }
  0xb1   :  { %v282_v12 = vsel %vm280_vm4, %v281_v9, %v277_v6 }
  0xb2   :  { %v135_v10 = vsel %vm133_vm3, %v134_v8, %v132_v39  ;;  %v283_v20 = vadd.s32 %v282_v12, %v278_v17  ;;  %v175_v9 = vand.u32 3, %v174_v3  ;;  %vm173_vm3 = vweird.f32 %v767_v5 }
  0xb3   :  { %v136_v11 = vclz %v135_v10  ;;  %v487_v10 = vand.u32 3, %v157_v62 }
  0xb4   :  { %v284_v16 = vadd.s32 536870912, %v283_v20  ;;  %vm176_vm12 = vcmp.lt.s32.totalorder %v175_v9, 2  ;;  %vm177_vm0 = vcmp.eq.s32.totalorder %v175_v9, 0  ;;  %vm180_vm1 = vcmp.eq.s32.totalorder %v175_v9, 2 }
  0xb5   :  { %v681_v15 = vadd.s32 4294967294, %v136_v11  ;;  %vm488_vm13 = vcmp.lt.s32.totalorder %v487_v10, 2  ;;  %vm489_vm14 = vcmp.eq.s32.totalorder %v487_v10, 0  ;;  %vm492_vm15 = vcmp.eq.s32.totalorder %v487_v10, 2 }
  0xb6   :  { %v901_v19 = vshrl.u32 %v284_v16, 30 }
  0xb7   :  { %vm682_vm5 = vcmp.lt.s32.totalorder %v681_v15, 0 }
  0xb8   :  { %v139_v18 = vsel %vm682_vm5, 0, %v681_v15  ;;  %v286_v28 = vshll.u32 %v901_v19, 30  ;;  %v309_v15 = vsub.s32 4, %v901_v19 }
  0xb9   :  { %v140_v22 = vsub.s32 32, %v139_v18  ;;  %v144_v23 = vsub.s32 4294967266, %v139_v18  ;;  %v141_v29 = vshll.u32 %v132_v39, %v139_v18 }
  0xba   :  { %v287_v38 = vsub.s32 %v283_v20, %v286_v28 }
  0xbb   :  { %v142_v30 = vshrl.u32 %v124_v59, %v140_v22  ;;  %v145_v25 = vadd.s32 127, %v144_v23 }
  0xbc   :  { %vm288_vm6 = vcmp.lt.s32.totalorder %v287_v38, 0  ;;  %v289_v32 = vsub.s32 0, %v287_v38 }
  0xbd   :  { %v143_v31 = vor.u32 %v142_v30, %v141_v29  ;;  %v146_v33 = vshll.u32 %v145_v25, 23  ;;  %v310_v29 = vsel %vm187_vm10, %v309_v15, %v901_v19 }
  0xbe   :  { %v290_v35 = vsel %vm288_vm6, %v289_v32, %v287_v38  ;;  %v312_v19 = vsel %vm921_vm11, 0, %v310_v29 }
  0xbf   :  { %v147_v34 = vor.u32 4788187, %v146_v33  ;;  %v150_v37 = vcvt.s32.f32 %v143_v31  ;;  %v291_v40 = vclz %v290_v35 }
  0xc1   :  { %v148_v36 = vand.u32 2147483647, %v147_v34  ;;  %v684_v42 = vadd.s32 4294967294, %v291_v40 }
  0xc3   :  { %v151_v41 = vmul.f32 %v150_v37, %v148_v36  ;;  %vm685_vm7 = vcmp.lt.s32.totalorder %v684_v42, 0 }
  0xc4   :  { %v294_v43 = vsel %vm685_vm7, 0, %v684_v42 }
  0xc5   :  { %v152_v27 = vxor.u32 2147483648, %v151_v41  ;;  %v295_v46 = vsub.s32 32, %v294_v43  ;;  %v299_v47 = vsub.s32 4294967266, %v294_v43  ;;  %v296_v53 = vshll.u32 %v287_v38, %v294_v43 }
  0xc7   :  { %v153_v44 = vsel %vm32_vm9, %v152_v27, %v151_v41  ;;  %v297_v54 = vshrl.u32 %v279_v45, %v295_v46  ;;  %v300_v55 = vadd.s32 127, %v299_v47  ;;  %v329_v27 = vadd.s32 3, %v312_v19 }
  0xc8   :  { %v156_v48 = vsel %vm908_vm8, %v767_v5, %v153_v44  ;;  %v641_v45 = vand.u32 3, %v312_v19 }
  0xc9   :  { %v158_v49 = vmul.f32 %v156_v48, %v156_v48  ;;  %v298_v58 = vor.u32 %v297_v54, %v296_v53  ;;  %v301_v60 = vshll.u32 %v300_v55, 23  ;;  %v330_v46 = vand.u32 3, %v329_v27 }
  0xca   :  { %vm642_vm4 = vcmp.lt.s32.totalorder %v641_v45, 2  ;;  %vm643_vm5 = vcmp.eq.s32.totalorder %v641_v45, 0  ;;  %vm646_vm9 = vcmp.eq.s32.totalorder %v641_v45, 2 }
  0xcb   :  { %v159_v7 = vmul.f32 -0.001358992, %v158_v49  ;;  %v166_v57 = vmul.f32 -0.00019511016, %v158_v49  ;;  %v302_v63 = vor.u32 4788187, %v301_v60  ;;  %v305_v2 = vcvt.s32.f32 %v298_v58 }
  0xcc   :  { %vm331_vm6 = vcmp.lt.s32.totalorder %v330_v46, 2  ;;  %vm332_vm7 = vcmp.eq.s32.totalorder %v330_v46, 0  ;;  %vm335_vm8 = vcmp.eq.s32.totalorder %v330_v46, 2 }
  0xcd   :  { %v160_v50 = vadd.f32 0.041655596, %v159_v7  ;;  %v167_v51 = vadd.f32 0.008332121, %v166_v57  ;;  %v303_v21 = vand.u32 2147483647, %v302_v63 }
  0xcf   :  { %v161_v0 = vmul.f32 %v160_v50, %v158_v49  ;;  %v168_v61 = vmul.f32 %v167_v51, %v158_v49  ;;  %v306_v56 = vmul.f32 %v305_v2, %v303_v21 }
  0xd1   :  { %v162_v4 = vadd.f32 -0.4999988, %v161_v0  ;;  %v169_v39 = vadd.f32 -0.16666654, %v168_v61  ;;  %v307_v8 = vxor.u32 2147483648, %v306_v56 }
  0xd3   :  { %v163_v6 = vmul.f32 %v162_v4, %v158_v49  ;;  %v170_v1 = vmul.f32 %v169_v39, %v158_v49  ;;  %v308_v20 = vsel %vm187_vm10, %v307_v8, %v306_v56  ;;  %vm328_vm10 = vweird.f32 %v773_v13 }
  0xd4   :  { %v311_v16 = vsel %vm921_vm11, %v773_v13, %v308_v20  ;;  %vm659_vm11 = vcmask 1048064  }
  0xd5   :  { %v164_v17 = vadd.f32 1.0, %v163_v6  ;;  %v171_v11 = vadd.f32 1.0, %v170_v1  ;;  %v313_v22 = vmul.f32 %v311_v16, %v311_v16 }
  0xd7   :  { %v172_v18 = vmul.f32 %v171_v11, %v156_v48  ;;  %v181_v59 = vxor.u32 2147483648, %v164_v17  ;;  %v314_v23 = vmul.f32 -0.001358992, %v313_v22  ;;  %v321_v30 = vmul.f32 -0.00019511016, %v313_v22 }
  0xd9   :  { %v178_v14 = vxor.u32 2147483648, %v172_v18  ;;  %v494_v28 = vsel %vm492_vm15, %v181_v59, %v172_v18  ;;  %v182_v31 = vsel %vm180_vm1, %v181_v59, %v172_v18  ;;  %v315_v33 = vadd.f32 0.041655596, %v314_v23 }
  0xda   :  { %v322_v35 = vadd.f32 0.008332121, %v321_v30 }
  0xdb   :  { %v491_v25 = vsel %vm489_vm14, %v164_v17, %v178_v14  ;;  %v179_v38 = vsel %vm177_vm0, %v164_v17, %v178_v14  ;;  %v316_v40 = vmul.f32 %v315_v33, %v313_v22 }
  0xdc   :  { %v495_v32 = vsel %vm488_vm13, %v491_v25, %v494_v28  ;;  %v183_v34 = vsel %vm176_vm12, %v179_v38, %v182_v31  ;;  %v323_v41 = vmul.f32 %v322_v35, %v313_v22 }
  0xdd   :  { %v496_v36 = vsel %vm173_vm3, nan, %v495_v32  ;;  %v184_v37 = vsel %vm173_vm3, nan, %v183_v34  ;;  %v317_v42 = vadd.f32 -0.4999988, %v316_v40 }
  0xde   :  { %653 = vrot.lane.b32.xlu1 %v496_v36, %s738_s0  ;;  %341 = vst.msk [vmem:[#allocation2] sm:$0xff] %vm340_vm2, %v184_v37  ;;  %v324_v26 = vadd.f32 -0.16666654, %v323_v41 }
  0xdf   :  { %v318_v5 = vmul.f32 %v317_v42, %v313_v22 }
  0xe0   :  { %v325_v24 = vmul.f32 %v324_v26, %v313_v22 }
  0xe1   :  { %v319_v43 = vadd.f32 1.0, %v318_v5 }
  0xe2   :  { %v326_v44 = vadd.f32 1.0, %v325_v24 }
  0xe3   :  { %v336_v52 = vxor.u32 2147483648, %v319_v43 }
  0xe4   :  { %v327_v47 = vmul.f32 %v326_v44, %v311_v16 }
  0xe6   :  { %v333_v48 = vxor.u32 2147483648, %v327_v47  ;;  %v648_v53 = vsel %vm646_vm9, %v336_v52, %v327_v47  ;;  %v337_v55 = vsel %vm335_vm8, %v336_v52, %v327_v47 }
  0xe8   :  { %v645_v49 = vsel %vm643_vm5, %v319_v43, %v333_v48  ;;  %v334_v54 = vsel %vm332_vm7, %v319_v43, %v333_v48 }
  0xe9   :  { %v649_v7 = vsel %vm642_vm4, %v645_v49, %v648_v53  ;;  %v338_v57 = vsel %vm331_vm6, %v334_v54, %v337_v55 }
  0xea   :  { %v650_v58 = vsel %vm328_vm10, nan, %v649_v7  ;;  %v339_v60 = vsel %vm328_vm10, nan, %v338_v57 }
  0xeb   :  { %655 = vrot.lane.b32.xlu1 %v650_v58, %s738_s0  ;;  %342 = vst.msk [vmem:[#allocation2 + $0x8] sm:$0xff] %vm340_vm2, %v339_v60 }
 0x150   :  { %v654_v62 = vpop.permute.xlu1 %653 }
 0x151   :  { %660 = vst.msk [vmem:[#allocation2] sm:$0xff] %vm659_vm11, %v654_v62 }
 0x15d   :  { %v656_v13 = vpop.permute.xlu1 %655 }
 0x15e   :  { %661 = vst.msk [vmem:[#allocation2 + $0x8] sm:$0xff] %vm659_vm11, %v656_v13 }
 0x15f   :  { %674 = dma.vmem_to_hbm [thread:$0]  %s667_s15, 256, %s669_s18, [#allocation3], %s740_s19, %s740_s19, %s741_s20  }
 0x160   :  { %729 = dma.done.wait [#allocation3], 256  }
 0x161   :  { %730 = vsyncadd [#allocation3], 4294967040 }
 0x162   :  { %679 = vsyncpa [#allocation3], 1 }

</bundles_post_ra>
